<compile_context>
chip_gen: v5e
topology: v5e:2x2
jax: 0.10.0
libtpu: 0.0.40
codegen_flags: <defaults>
</compile_context>

<pallas_src>
import jax
import jax.numpy as jnp
from jax.experimental import pallas as pl
from jax.experimental.pallas import tpu as pltpu

EPS = 1e-6


def _round_up(x, m):
    return ((x + m - 1) // m) * m


def _make_layernorm_kernel(h_real, h_pad, eps):
    """Kernel closure over static sizes so zero-padded lanes don't corrupt the stats."""
    needs_mask = h_pad != h_real
    inv_h = 1.0 / float(h_real)

    def kernel(x_ref, g_ref, b_ref, o_ref):
        # x_ref: (TM, h_pad); g_ref/b_ref: (1, h_pad) f32; o_ref: (TM, h_pad)
        x = x_ref[...].astype(jnp.float32)
        # Zero padding does not change the sum, so divide by the real hidden size.
        mean = jnp.sum(x, axis=-1, keepdims=True) * inv_h
        xc = x - mean
        if needs_mask:
            lane = jax.lax.broadcasted_iota(jnp.int32, x.shape, dimension=1)
            xc = jnp.where(lane < h_real, xc, 0.0)
        var = jnp.sum(xc * xc, axis=-1, keepdims=True) * inv_h
        std = jnp.sqrt(var)
        # Module semantics: divide by (std + eps), NOT sqrt(var + eps).
        # approx=False keeps full precision (reference tolerance is 1e-5).
        inv = pl.reciprocal(std + eps, approx=False)
        out = (xc * inv) * g_ref[...] + b_ref[...]
        o_ref[...] = out.astype(o_ref.dtype)

    return kernel


def layernorm(x, gamma, beta, *, eps=EPS, vmem_budget_bytes=24 << 20):
    """x: (..., H); gamma, beta: (H,). Matches the PyTorch module's forward."""
    orig_shape = x.shape
    H = orig_shape[-1]
    rows = 1
    for d in orig_shape[:-1]:
        rows *= d
    rows = max(rows, 1)

    itemsize = jnp.dtype(x.dtype).itemsize
    # Lane-dense hidden dimension (multiple of 128) for unmasked stores.
    h_pad = _round_up(H, 128)

    # Row tile: largest that keeps 2 input + 2 output double-buffered blocks within
    # the budget (budget chosen to be safe on v7x's smaller 64 MiB physical VMEM).
    bytes_per_row = 4 * h_pad * itemsize          # 2 in-buffers + 2 out-buffers per row
    pack = 16 if itemsize <= 2 else 8             # bf16/fp8 pack rows along sublanes
    tm = max(pack, vmem_budget_bytes // max(bytes_per_row, 1))
    tm = min(tm, 1024)                            # beyond ~85% of HBM roofline, no gain
    tm = min(tm, _round_up(rows, pack))           # don't over-pad tiny inputs
    tm = max(pack, (tm // pack) * pack)

    # Limit row over-padding to ~12.5% of the real row count: shrink the tile (in pack
    # multiples) instead of paying for large zero-padded tiles in HBM traffic.
    while tm > pack and (_round_up(rows, tm) - rows) * 8 > rows:
        tm = max(pack, ((tm // 2) // pack) * pack)

    rows_pad = _round_up(rows, tm)

    # Explicit scoped-VMEM limit sized from actual buffer usage (+ margin).
    usage = 4 * tm * h_pad * itemsize + 4 * h_pad * 4
    vmem_limit = min(max(32 << 20, int(usage * 1.5) + (2 << 20)), 56 << 20)

    x2 = x.reshape(rows, H)
    pad_r = rows_pad - rows
    pad_h = h_pad - H
    if pad_r or pad_h:
        x2 = jnp.pad(x2, ((0, pad_r), (0, pad_h)))

    g2 = gamma.astype(jnp.float32).reshape(1, H)
    b2 = beta.astype(jnp.float32).reshape(1, H)
    if pad_h:
        g2 = jnp.pad(g2, ((0, 0), (0, pad_h)))
        b2 = jnp.pad(b2, ((0, 0), (0, pad_h)))

    out = pl.pallas_call(
        _make_layernorm_kernel(H, h_pad, eps),
        out_shape=jax.ShapeDtypeStruct((rows_pad, h_pad), x.dtype),
        grid_spec=pltpu.PrefetchScalarGridSpec(
            num_scalar_prefetch=0,
            grid=(rows_pad // tm,),
            in_specs=[
                pl.BlockSpec((tm, h_pad), lambda i: (i, 0)),
                pl.BlockSpec((1, h_pad), lambda i: (0, 0)),
                pl.BlockSpec((1, h_pad), lambda i: (0, 0)),
            ],
            out_specs=pl.BlockSpec((tm, h_pad), lambda i: (i, 0)),
        ),
        compiler_params=pltpu.CompilerParams(
            dimension_semantics=("parallel",),
            vmem_limit_bytes=vmem_limit,
        ),
    )(x2, g2, b2)

    if pad_r or pad_h:
        out = out[:rows, :H]
    return out.reshape(orig_shape)


if __name__ == "__main__":
    key = jax.random.PRNGKey(0)
    batch, seq, hidden = 2, 8, 32
    x = jax.random.normal(key, (batch, seq, hidden), dtype=jnp.float32)

    # Deterministic params per the module's __init__: gamma = ones, beta = zeros.
    gamma = jnp.ones((hidden,), dtype=jnp.float32)
    beta = jnp.zeros((hidden,), dtype=jnp.float32)

    y = layernorm(x, gamma, beta)
    jax.block_until_ready(y)

    # Pure-JAX reference check (matches the PyTorch module's semantics).
    mean = jnp.mean(x, axis=-1, keepdims=True)
    std = jnp.sqrt(jnp.mean((x - mean) ** 2, axis=-1, keepdims=True))
    ref = gamma * (x - mean) / (std + EPS) + beta
    assert jnp.allclose(y, ref, atol=1e-5, rtol=1e-5), "mismatch vs reference"

    print("KERNEL_OK")
</pallas_src>

<mosaic_0001>
module attributes {stable_mosaic.version = 11 : i64} {
  func.func @kernel(%arg0: i32, %arg1: memref<16x128xf32, #tpu.memory_space<vmem>>, %arg2: memref<1x128xf32, #tpu.memory_space<vmem>>, %arg3: memref<1x128xf32, #tpu.memory_space<vmem>>, %arg4: memref<16x128xf32, #tpu.memory_space<vmem>>) attributes {dimension_semantics = [#tpu.dimension_semantics<parallel>], iteration_bounds = array<i64: 1>, scalar_prefetch = 0 : i64, scratch_operands = 0 : i64, tpu.core_type = #tpu.core_type<tc>, window_params = [{transform_indices = @transform_0, window_bounds = array<i64: 16, 128>}, {pipeline_mode = #tpu.pipeline_mode<synchronous>, transform_indices = @transform_1, window_bounds = array<i64: 1, 128>}, {pipeline_mode = #tpu.pipeline_mode<synchronous>, transform_indices = @transform_2, window_bounds = array<i64: 1, 128>}, {transform_indices = @transform_3, window_bounds = array<i64: 16, 128>}]} {
    %c0 = arith.constant 0 : index
    %c0_0 = arith.constant 0 : index
    %0 = vector.load %arg1[%c0, %c0_0] : memref<16x128xf32, #tpu.memory_space<vmem>>, vector<16x128xf32>
    %cst = arith.constant dense<0.000000e+00> : vector<16xf32>
    %1 = vector.multi_reduction <add>, %0, %cst [1] : vector<16x128xf32> to vector<16xf32>
    %2 = vector.shape_cast %1 : vector<16xf32> to vector<16x1xf32>
    %cst_1 = arith.constant 3.125000e-02 : f32
    %3 = vector.broadcast %cst_1 : f32 to vector<16x1xf32>
    %4 = arith.mulf %2, %3 : vector<16x1xf32>
    %5 = vector.broadcast %4 : vector<16x1xf32> to vector<16x128xf32>
    %6 = arith.subf %0, %5 : vector<16x128xf32>
    %7 = tpu.iota {dimensions = array<i32: 1>} : vector<16x128xi32>
    %c32_i32 = arith.constant 32 : i32
    %8 = vector.broadcast %c32_i32 : i32 to vector<16x128xi32>
    %9 = arith.cmpi slt, %7, %8 : vector<16x128xi32>
    %cst_2 = arith.constant 0.000000e+00 : f32
    %10 = vector.broadcast %cst_2 : f32 to vector<16x128xf32>
    %11 = arith.select %9, %6, %10 : vector<16x128xi1>, vector<16x128xf32>
    %12 = arith.mulf %11, %11 : vector<16x128xf32>
    %cst_3 = arith.constant dense<0.000000e+00> : vector<16xf32>
    %13 = vector.multi_reduction <add>, %12, %cst_3 [1] : vector<16x128xf32> to vector<16xf32>
    %14 = vector.shape_cast %13 : vector<16xf32> to vector<16x1xf32>
    %cst_4 = arith.constant 3.125000e-02 : f32
    %15 = vector.broadcast %cst_4 : f32 to vector<16x1xf32>
    %16 = arith.mulf %14, %15 : vector<16x1xf32>
    %17 = math.sqrt %16 : vector<16x1xf32>
    %cst_5 = arith.constant 9.99999997E-7 : f32
    %18 = vector.broadcast %cst_5 : f32 to vector<16x1xf32>
    %19 = arith.addf %17, %18 : vector<16x1xf32>
    %20 = tpu.reciprocal %19 : vector<16x1xf32> -> vector<16x1xf32>
    %21 = vector.broadcast %20 : vector<16x1xf32> to vector<16x128xf32>
    %22 = arith.mulf %11, %21 : vector<16x128xf32>
    %c0_6 = arith.constant 0 : index
    %c0_7 = arith.constant 0 : index
    %23 = vector.load %arg2[%c0_6, %c0_7] : memref<1x128xf32, #tpu.memory_space<vmem>>, vector<1x128xf32>
    %24 = vector.broadcast %23 : vector<1x128xf32> to vector<16x128xf32>
    %25 = arith.mulf %22, %24 : vector<16x128xf32>
    %c0_8 = arith.constant 0 : index
    %c0_9 = arith.constant 0 : index
    %26 = vector.load %arg3[%c0_8, %c0_9] : memref<1x128xf32, #tpu.memory_space<vmem>>, vector<1x128xf32>
    %27 = vector.broadcast %26 : vector<1x128xf32> to vector<16x128xf32>
    %28 = arith.addf %25, %27 : vector<16x128xf32>
    %c0_10 = arith.constant 0 : index
    %c0_11 = arith.constant 0 : index
    %29 = vector.load %arg4[%c0_10, %c0_11] : memref<16x128xf32, #tpu.memory_space<vmem>>, vector<16x128xf32>
    tpu.vector_store %arg4[%c0_10, %c0_11], %28 {strides = array<i32>} : memref<16x128xf32, #tpu.memory_space<vmem>>, vector<16x128xf32>,
    return
  }
  func.func @transform_0(%arg0: i32) -> (i32, i32) {
    %c0_i32 = arith.constant 0 : i32
    %c0_i32_0 = arith.constant 0 : i32
    return %arg0, %c0_i32 : i32, i32
  }
  func.func @transform_1(%arg0: i32) -> (i32, i32) {
    %c0_i32 = arith.constant 0 : i32
    %c0_i32_0 = arith.constant 0 : i32
    %c0_i32_1 = arith.constant 0 : i32
    return %c0_i32, %c0_i32_0 : i32, i32
  }
  func.func @transform_2(%arg0: i32) -> (i32, i32) {
    %c0_i32 = arith.constant 0 : i32
    %c0_i32_0 = arith.constant 0 : i32
    %c0_i32_1 = arith.constant 0 : i32
    return %c0_i32, %c0_i32_0 : i32, i32
  }
  func.func @transform_3(%arg0: i32) -> (i32, i32) {
    %c0_i32 = arith.constant 0 : i32
    %c0_i32_0 = arith.constant 0 : i32
    return %arg0, %c0_i32 : i32, i32
  }
}

</mosaic_0001>

<bundles_post_ra>
// kernel: tpu_custom_call.1
= control target key start
LH: loop header
LB: loop body
LE: loop exit
PB: predicated region body
PF: predicated region fallthrough
CT: control target
= control target key end

     0   :  { %8 = vsyncpa [#allocation3], 0  ;;  %s299_s0 = inlined_call_operand.hbm [shape: f32[16,128], index: 0, kind: input, shape index: {}]   ;;  %s300_s1 = inlined_call_operand.hbm [shape: f32[1,128], index: 1, kind: input, shape index: {}]   ;;  %s301_s2 = inlined_call_operand.vmem [shape: f32[1,128], index: 2, kind: input, shape index: {}]   ;;  %s302_s3 = inlined_call_operand.hbm [shape: f32[16,128], index: 3, kind: output, shape index: {}]  }
   0x1   :  { %9 = vsyncpa [#allocation6], 0 }
   0x2   :  { %10 = vsyncpa [#allocation4], 0  ;;  %s15_s14 = sshll.u32 %s299_s0, 4  ;;  %s251_s15 = smov [#allocation2]   ;;  %s16_s14 = int_to_ptr.hbm [resolvable:$true] %s15_s14 }
   0x3   :  { %s17_s16 = sshll.u32 %s251_s15, 4  ;;  %s29_s19 = sshll.u32 %s300_s1, 4  ;;  %s18_s16 = int_to_ptr.vmem [resolvable:$true] %s17_s16  ;;  %s30_s19 = int_to_ptr.hbm [resolvable:$true] %s29_s19 }
   0x4   :  { %s252_s20 = smov 128   ;;  %s253_s21 = smov 8  }
   0x5   :  { %23 = dma.hbm_to_vmem [thread:$0]  %s16_s14, 256, %s18_s16, [#allocation3], %s252_s20, %s252_s20, %s253_s21  }
   0x6   :  { %s254_s22 = smov [#allocation5]  }
   0x7   :  { %s31_s23 = sshll.u32 %s254_s22, 4  ;;  %s32_s23 = int_to_ptr.vmem [resolvable:$true] %s31_s23 }
   0x8   :  { %34 = dma.hbm_to_vmem [thread:$0]  %s30_s19, 16, %s32_s23, [#allocation6]  }
   0x9   :  { %245 = dma.done.wait [#allocation3], 256  }
   0xa   :  { %246 = vsyncadd [#allocation3], 4294967040 }
   0xb   :  { %247 = dma.done.wait [#allocation6], 16  }
   0xc   :  { %248 = vsyncadd [#allocation6], 4294967280  ;;  %v45_v0 = vld [vmem:[#allocation2] sm:$0xff]  ;;  %v46_v1 = vld [vmem:[#allocation2 + $0x8] sm:$0xff]  ;;  %v55_v2 = vlaneseq  ;;  %s255_s24 = smov [#allocation7]   ;;  %s144_s27 = sshll.u32 %s302_s3, 4  ;;  %s145_s27 = int_to_ptr.hbm [resolvable:$true] %s144_s27 }
   0xd   :  { %47 = vadd.xlane.f32.xlu0 %v45_v0  ;;  %v163_v51 = vld [vmem:[#allocation5] ss:$0 sm:$0xff]  ;;  %v164_v55 = vld [vmem:[%s301_s2] ss:$0 sm:$0xff]  ;;  %s142_s25 = sshll.u32 %s255_s24, 4  ;;  %s143_s25 = int_to_ptr.vmem [resolvable:$true] %s142_s25 }
   0xe   :  { %v56_v3 = vand.u32 127, %v55_v2 }
  0x10   :  { %vm57_vm0 = vcmp.lt.s32.totalorder %v56_v3, 32 }
  0x15   :  { %49 = vadd.xlane.f32.xlu0 %v46_v1 }
  0x80   :  { %v48_v4 = vpop.xlane.xlu0 %47 }
  0x81   :  { %v51_v5 = vmul.f32 0.03125, %v48_v4 }
  0x83   :  { %v53_v6 = vsub.f32 %v45_v0, %v51_v5 }
  0x85   :  { %v58_v7 = vsel %vm57_vm0, %v53_v6, 0.0 }
  0x86   :  { %v60_v8 = vmul.f32 %v58_v7, %v58_v7 }
  0x88   :  { %62 = vadd.xlane.f32.xlu1 %v60_v8  ;;  %v50_v9 = vpop.xlane.xlu0 %49 }
  0x89   :  { %v52_v10 = vmul.f32 0.03125, %v50_v9 }
  0x8b   :  { %v54_v11 = vsub.f32 %v46_v1, %v52_v10 }
  0x8d   :  { %v285_v12 = vsel %vm57_vm0, %v54_v11, 0.0 }
  0x8e   :  { %v61_v13 = vmul.f32 %v285_v12, %v285_v12 }
  0x90   :  { %64 = vadd.xlane.f32.xlu1 %v61_v13 }
  0xfb   :  { %v63_v14 = vpop.xlane.xlu1 %62 }
  0xfc   :  { %v66_v15 = vmul.f32 0.03125, %v63_v14 }
  0xfe   :  { %165 = vrsqrt.f32 %v66_v15  ;;  %vm75_vm1 = vcmp.eq.f32.partialorder %v66_v15, inf  ;;  %v78_v28 = vand.u32 2147483648, %v66_v15  ;;  %vm77_vm2 = vcmp.eq.f32.partialorder %v66_v15, 0.0 }
 0x103   :  { %v65_v16 = vpop.xlane.xlu1 %64 }
 0x104   :  { %v166_v17 = vpop.eup %165  ;;  %v67_v18 = vmul.f32 0.03125, %v65_v16 }
 0x105   :  { %v69_v19 = vmul.f32 %v166_v17, %v66_v15 }
 0x106   :  { %167 = vrsqrt.f32 %v67_v18  ;;  %vm87_vm3 = vcmp.eq.f32.partialorder %v67_v18, inf  ;;  %v90_v36 = vand.u32 2147483648, %v67_v18  ;;  %vm89_vm4 = vcmp.eq.f32.partialorder %v67_v18, 0.0 }
 0x107   :  { %v70_v20 = vmul.f32 %v166_v17, %v69_v19 }
 0x109   :  { %v71_v21 = vmul.f32 0.5, %v70_v20 }
 0x10b   :  { %v72_v22 = vsub.f32 1.5, %v71_v21 }
 0x10c   :  { %v168_v23 = vpop.eup %167 }
 0x10d   :  { %v73_v24 = vmul.f32 %v166_v17, %v72_v22  ;;  %v81_v25 = vmul.f32 %v168_v23, %v67_v18 }
 0x10f   :  { %v74_v26 = vmul.f32 %v73_v24, %v66_v15  ;;  %v82_v27 = vmul.f32 %v168_v23, %v81_v25 }
 0x111   :  { %v76_v29 = vsel %vm75_vm1, %v66_v15, %v74_v26  ;;  %v83_v30 = vmul.f32 0.5, %v82_v27 }
 0x112   :  { %v79_v31 = vsel %vm77_vm2, %v78_v28, %v76_v29 }
 0x113   :  { %v92_v32 = vadd.f32 1e-06, %v79_v31  ;;  %v84_v33 = vsub.f32 1.5, %v83_v30 }
 0x115   :  { %169 = vrcp.f32 %v92_v32  ;;  %v85_v34 = vmul.f32 %v168_v23, %v84_v33  ;;  %v105_v43 = vand.u32 2147483648, %v92_v32  ;;  %v103_v45 = vand.u32 2147483647, %v92_v32 }
 0x116   :  { %vm99_vm6 = vweird.f32 %v92_v32 }
 0x117   :  { %v86_v35 = vmul.f32 %v85_v34, %v67_v18  ;;  %v106_v48 = vor.u32 1.1754944e-38, %v105_v43  ;;  %vm104_vm8 = vcmp.eq.f32.partialorder %v103_v45, 8.507059e+37 }
 0x119   :  { %v88_v37 = vsel %vm87_vm3, %v67_v18, %v86_v35 }
 0x11a   :  { %v91_v38 = vsel %vm89_vm4, %v90_v36, %v88_v37 }
 0x11b   :  { %v170_v39 = vpop.eup %169  ;;  %v93_v40 = vadd.f32 1e-06, %v91_v38 }
 0x11c   :  { %v95_v41 = vmul.f32 %v170_v39, %v92_v32  ;;  %vm100_vm5 = vweird.f32 %v170_v39 }
 0x11d   :  { %171 = vrcp.f32 %v93_v40  ;;  %vm101_vm7 = vmor %vm99_vm6, %vm100_vm5  ;;  %v119_v56 = vand.u32 2147483648, %v93_v40  ;;  %v117_v58 = vand.u32 2147483647, %v93_v40  ;;  %vm113_vm10 = vweird.f32 %v93_v40 }
 0x11e   :  { %v96_v42 = vsub.f32 1.0, %v95_v41 }
 0x11f   :  { %v120_v62 = vor.u32 1.1754944e-38, %v119_v56  ;;  %vm118_vm12 = vcmp.eq.f32.partialorder %v117_v58, 8.507059e+37 }
 0x120   :  { %v97_v44 = vmul.f32 %v170_v39, %v96_v42 }
 0x122   :  { %v98_v46 = vadd.f32 %v170_v39, %v97_v44 }
 0x123   :  { %v172_v47 = vpop.eup %171 }
 0x124   :  { %v102_v49 = vsel %vm101_vm7, %v170_v39, %v98_v46  ;;  %v109_v50 = vmul.f32 %v172_v47, %v93_v40  ;;  %vm114_vm9 = vweird.f32 %v172_v47 }
 0x125   :  { %v107_v52 = vsel %vm104_vm8, %v106_v48, %v102_v49  ;;  %vm115_vm11 = vmor %vm113_vm10, %vm114_vm9 }
 0x126   :  { %v110_v53 = vsub.f32 1.0, %v109_v50  ;;  %v122_v54 = vmul.f32 %v107_v52, %v58_v7 }
 0x128   :  { %v111_v57 = vmul.f32 %v172_v47, %v110_v53  ;;  %v128_v59 = vmul.f32 %v163_v51, %v122_v54 }
 0x12a   :  { %v112_v60 = vadd.f32 %v172_v47, %v111_v57  ;;  %v134_v61 = vadd.f32 %v164_v55, %v128_v59 }
 0x12c   :  { %v116_v63 = vsel %vm115_vm11, %v172_v47, %v112_v60  ;;  %136 = vst [vmem:[#allocation7] sm:$0xff] %v134_v61 }
 0x12d   :  { %v121_v0 = vsel %vm118_vm12, %v120_v62, %v116_v63 }
 0x12e   :  { %v123_v1 = vmul.f32 %v121_v0, %v285_v12 }
 0x130   :  { %v129_v2 = vmul.f32 %v163_v51, %v123_v1 }
 0x132   :  { %v135_v3 = vadd.f32 %v164_v55, %v129_v2 }
 0x134   :  { %137 = vst [vmem:[#allocation7 + $0x8] sm:$0xff] %v135_v3 }
 0x135   :  { %150 = dma.vmem_to_hbm [thread:$0]  %s143_s25, 256, %s145_s27, [#allocation4], %s252_s20, %s252_s20, %s253_s21  }
 0x136   :  { %249 = dma.done.wait [#allocation4], 256  }
 0x137   :  { %250 = vsyncadd [#allocation4], 4294967040 }
 0x138   :  { %155 = vsyncpa [#allocation3], 1 }
 0x139   :  { %156 = vsyncpa [#allocation6], 1 }
 0x13a   :  { %157 = vsyncpa [#allocation4], 1 }

</bundles_post_ra>
